<compile_context>
chip_gen: v6e
topology: v6e:2x2x1
jax: 0.10.0
libtpu: 0.0.40
codegen_flags: <defaults>
</compile_context>

<pallas_src>
import jax
import jax.numpy as jnp
from jax.experimental import pallas as pl
from jax.experimental.pallas import tpu as pltpu


def _maxout_kernel(pos_ref, neg_ref, x_ref, o_ref):
    # x_ref/o_ref: (TR, TW) tiles; pos_ref/neg_ref: (TR, 1) per-row scales
    # broadcast along lanes.
    x = x_ref[...]
    scale = jnp.where(x >= 0, pos_ref[...], neg_ref[...])   # compare + select
    o_ref[...] = scale * x                                   # single multiply


def _round_up(v: int, m: int) -> int:
    return ((v + m - 1) // m) * m


def _sublane_multiple(dtype) -> int:
    # Sub-32-bit dtypes pack rows along sublanes: bf16 needs multiples of 16,
    # int8/fp8 need 32; 32-bit needs 8.
    itemsize = jnp.dtype(dtype).itemsize
    if itemsize >= 4:
        return 8
    if itemsize == 2:
        return 16
    return 32


@jax.jit
def maxout(x_nchw, pos_scale, neg_scale):
    """x_nchw: (N, C, H, W); pos_scale/neg_scale: (C,). Returns (N, C, H, W)."""
    N, C, H, W = x_nchw.shape
    R, HW = N * C, H * W
    dtype = x_nchw.dtype
    sub = _sublane_multiple(dtype)

    # Lane-dense 2-D view: rows = N*C (sublanes), cols = H*W (lanes).
    # (Free reshape: NCHW is contiguous in (N*C, H*W) order.)
    x2d = x_nchw.reshape(R, HW)
    pos2d = jnp.tile(pos_scale.astype(dtype), N).reshape(R, 1)
    neg2d = jnp.tile(neg_scale.astype(dtype), N).reshape(R, 1)

    # Tile selection: sublane/lane-aligned, capped at 512x2048 (~4 MiB/buffer
    # in f32). x + out double-buffered ≈ 16 MiB live VMEM, under the explicit
    # 32 MiB limit below and well under v7x's 64 MiB/TC physical VMEM.
    TR = min(512, _round_up(R, sub))
    TW = min(2048, _round_up(HW, 128))

    # v7x has 2 TensorCores; make sure at least one "parallel" axis has >= 2
    # grid steps when the problem can be split, so work shards across them.
    if pl.cdiv(R, TR) * pl.cdiv(HW, TW) < 2:
        if R >= 2 * sub:
            TR = _round_up(pl.cdiv(R, 2), sub)
        elif HW > 128:
            TW = _round_up(pl.cdiv(HW, 2), 128)

    grid = (pl.cdiv(R, TR), pl.cdiv(HW, TW))

    out2d = pl.pallas_call(
        _maxout_kernel,
        out_shape=jax.ShapeDtypeStruct((R, HW), dtype),
        grid_spec=pltpu.PrefetchScalarGridSpec(
            num_scalar_prefetch=0,
            grid=grid,
            in_specs=[
                pl.BlockSpec((TR, 1), lambda i, j: (i, 0)),    # pos scale
                pl.BlockSpec((TR, 1), lambda i, j: (i, 0)),    # neg scale
                pl.BlockSpec((TR, TW), lambda i, j: (i, j)),   # x
            ],
            out_specs=pl.BlockSpec((TR, TW), lambda i, j: (i, j)),
        ),
        compiler_params=pltpu.CompilerParams(
            dimension_semantics=("parallel", "parallel"),
            # Explicit: v5e's scoped-VMEM default is 16 MiB; the 512x2048 f32
            # tiles (double-buffered x + out) need ~16-17 MiB.
            vmem_limit_bytes=32 << 20,
        ),
        # No input_output_aliases: see header comment (aliasing a non-donated
        # jit parameter would force XLA to insert a protective copy of x).
    )(pos2d, neg2d, x2d)

    return out2d.reshape(N, C, H, W)


def _maxout_ref(x, pos_scale, neg_scale):
    C = pos_scale.shape[0]
    pos = pos_scale.reshape(1, C, 1, 1)
    neg = neg_scale.reshape(1, C, 1, 1)
    return pos * jnp.maximum(x, 0.0) - neg * jnp.maximum(-x, 0.0)


if __name__ == "__main__":
    key = jax.random.PRNGKey(0)
    k1, k2, k3, k4 = jax.random.split(key, 4)

    # Primary shape consistent with the module (NCHW input, per-channel params).
    N, C, H, W = 2, 4, 16, 16
    x = jax.random.normal(k1, (N, C, H, W), dtype=jnp.float32)
    neg_scale = 0.25 * jnp.ones((C,), dtype=jnp.float32)   # Maxout neg_init
    pos_scale = 1.0 * jnp.ones((C,), dtype=jnp.float32)    # Maxout pos_init

    out = maxout(x, pos_scale, neg_scale)
    jax.block_until_ready(out)
    ref = _maxout_ref(x, pos_scale, neg_scale)
    assert out.shape == (N, C, H, W)
    assert jnp.allclose(out, ref, atol=1e-6, rtol=1e-6)

    # Non-(8,128)-aligned shape exercising the ragged-block path, with
    # non-trivial per-channel scales.
    N2, C2, H2, W2 = 2, 3, 7, 7
    x2 = jax.random.normal(k2, (N2, C2, H2, W2), dtype=jnp.float32)
    pos2 = jax.random.normal(k3, (C2,), dtype=jnp.float32)
    neg2 = jax.random.normal(k4, (C2,), dtype=jnp.float32)
    out2 = maxout(x2, pos2, neg2)
    jax.block_until_ready(out2)
    ref2 = _maxout_ref(x2, pos2, neg2)
    assert out2.shape == (N2, C2, H2, W2)
    assert jnp.allclose(out2, ref2, atol=1e-6, rtol=1e-6)

    # bf16 path: exercises the dtype-aware (16-row) sublane rounding and the
    # halved-HBM-bytes case.
    x_bf16 = x.astype(jnp.bfloat16)
    out3 = maxout(x_bf16, pos_scale, neg_scale)
    jax.block_until_ready(out3)
    ref3 = _maxout_ref(x_bf16.astype(jnp.float32), pos_scale, neg_scale)
    assert out3.dtype == jnp.bfloat16
    assert jnp.allclose(out3.astype(jnp.float32), ref3, atol=2e-2, rtol=2e-2)

    print("KERNEL_OK")
</pallas_src>

<mosaic_0001>
module attributes {stable_mosaic.version = 11 : i64} {
  func.func @_maxout_kernel(%arg0: i32, %arg1: i32, %arg2: memref<8x1xf32, #tpu.memory_space<vmem>>, %arg3: memref<8x1xf32, #tpu.memory_space<vmem>>, %arg4: memref<8x128xf32, #tpu.memory_space<vmem>>, %arg5: memref<8x128xf32, #tpu.memory_space<vmem>>) attributes {dimension_semantics = [#tpu.dimension_semantics<parallel>, #tpu.dimension_semantics<parallel>], iteration_bounds = array<i64: 1, 2>, scalar_prefetch = 0 : i64, scratch_operands = 0 : i64, tpu.core_type = #tpu.core_type<tc>, window_params = [{transform_indices = @transform_0, window_bounds = array<i64: 8, 1>}, {transform_indices = @transform_1, window_bounds = array<i64: 8, 1>}, {transform_indices = @transform_2, window_bounds = array<i64: 8, 128>}, {transform_indices = @transform_3, window_bounds = array<i64: 8, 128>}]} {
    %c0 = arith.constant 0 : index
    %c0_0 = arith.constant 0 : index
    %0 = vector.load %arg4[%c0, %c0_0] : memref<8x128xf32, #tpu.memory_space<vmem>>, vector<8x128xf32>
    %cst = arith.constant 0.000000e+00 : f32
    %1 = vector.broadcast %cst : f32 to vector<8x128xf32>
    %2 = arith.cmpf oge, %0, %1 : vector<8x128xf32>
    %c0_1 = arith.constant 0 : index
    %c0_2 = arith.constant 0 : index
    %3 = vector.load %arg2[%c0_1, %c0_2] : memref<8x1xf32, #tpu.memory_space<vmem>>, vector<8x1xf32>
    %c0_3 = arith.constant 0 : index
    %c0_4 = arith.constant 0 : index
    %4 = vector.load %arg3[%c0_3, %c0_4] : memref<8x1xf32, #tpu.memory_space<vmem>>, vector<8x1xf32>
    %5 = vector.shape_cast %3 : vector<8x1xf32> to vector<8x1xf32>
    %6 = vector.broadcast %5 : vector<8x1xf32> to vector<8x128xf32>
    %7 = vector.shape_cast %4 : vector<8x1xf32> to vector<8x1xf32>
    %8 = vector.broadcast %7 : vector<8x1xf32> to vector<8x128xf32>
    %9 = arith.select %2, %6, %8 : vector<8x128xi1>, vector<8x128xf32>
    %10 = arith.mulf %9, %0 : vector<8x128xf32>
    %c0_5 = arith.constant 0 : index
    %c0_6 = arith.constant 0 : index
    %11 = vector.load %arg5[%c0_5, %c0_6] : memref<8x128xf32, #tpu.memory_space<vmem>>, vector<8x128xf32>
    tpu.vector_store %arg5[%c0_5, %c0_6], %10 {strides = array<i32>} : memref<8x128xf32, #tpu.memory_space<vmem>>, vector<8x128xf32>,
    return
  }
  func.func @transform_0(%arg0: i32, %arg1: i32) -> (i32, i32) {
    %c0_i32 = arith.constant 0 : i32
    %c0_i32_0 = arith.constant 0 : i32
    return %arg0, %c0_i32 : i32, i32
  }
  func.func @transform_1(%arg0: i32, %arg1: i32) -> (i32, i32) {
    %c0_i32 = arith.constant 0 : i32
    %c0_i32_0 = arith.constant 0 : i32
    return %arg0, %c0_i32 : i32, i32
  }
  func.func @transform_2(%arg0: i32, %arg1: i32) -> (i32, i32) {
    %c0_i32 = arith.constant 0 : i32
    return %arg0, %arg1 : i32, i32
  }
  func.func @transform_3(%arg0: i32, %arg1: i32) -> (i32, i32) {
    %c0_i32 = arith.constant 0 : i32
    return %arg0, %arg1 : i32, i32
  }
}

</mosaic_0001>

<bundles_post_ra>
// kernel: tile.1
= control target key start
LH: loop header
LB: loop body
LE: loop exit
PB: predicated region body
PF: predicated region fallthrough
CT: control target
= control target key end

     0   :  { %s35_s8 = smov 125   ;;  %vm8_vm0 = vcmask 7168   ;;  %s36_s11 = smov 126   ;;  %s62_s0 = inlined_call_operand.vmem [shape: f32[2,4], index: 0, kind: input, shape index: {}]   ;;  %s63_s1 = inlined_call_operand.vmem [shape: f32[8,1], index: 1, kind: output, shape index: {}]  }
   0x1   :  { %v5_v0 = vld [vmem:[%s62_s0] sm:$0x3]  ;;  %s34_s0 = smov 127  }
   0x2   :  { %6 = vst [vmem:[#allocation0] sm:$0x3] %v5_v0 }
   0x9   :  { %v10_v1 = vld [vmem:[#allocation0] sm:$0x3]  }
   0xa   :  { %v22_v2 = vld [vmem:[#allocation0] sm:$0x3]   ;;  %11 = vrot.lane.b32.xlu0 %v10_v1, %s34_s0 }
   0xb   :  { %23 = vrot.lane.b32.xlu1 %v22_v2, %s35_s8  ;;  %v7_v3 = vld [vmem:[#allocation0] sm:$0x3]  }
   0xc   :  { %v16_v4 = vld [vmem:[#allocation0] sm:$0x3]   ;;  %9 = vst.msk [vmem:[%s63_s1] ss:$4 sm:$0x3] %vm8_vm0, %v7_v3  }
   0xe   :  { %17 = vrot.lane.b32.xlu0 %v16_v4, %s36_s11 }
  0x7c   :  { %v12_v5 = vpop.permute.xlu0 %11  }
  0x7d   :  { %v24_v6 = vpop.permute.xlu1 %23   ;;  %28 = vst.msk [vmem:[%s63_s1 + $0x1] ss:$4 sm:$0x3] %vm8_vm0, %v12_v5  }
  0x7e   :  { %30 = vst.msk [vmem:[%s63_s1 + $0x3] ss:$4 sm:$0x3] %vm8_vm0, %v24_v6  }
  0x80   :  { %v18_v7 = vpop.permute.xlu0 %17  }
  0x81   :  { %29 = vst.msk [vmem:[%s63_s1 + $0x2] ss:$4 sm:$0x3] %vm8_vm0, %v18_v7  }

// kernel: tile.13
= control target key start
LH: loop header
LB: loop body
LE: loop exit
PB: predicated region body
PF: predicated region fallthrough
CT: control target
= control target key end

     0   :  { %s22_s0 = inlined_call_operand.vmem [shape: f32[4], index: 0, kind: input, shape index: {}]   ;;  %s23_s1 = inlined_call_operand.vmem [shape: f32[2,4], index: 1, kind: output, shape index: {}]  }
   0x1   :  { %v4_v0 = vld [vmem:[%s22_s0] ss:$0 sm:$0xff] }
   0x2   :  { %5 = vst [vmem:[%s23_s1] sm:$0x3] %v4_v0 }

// kernel: maxout.1
= control target key start
LH: loop header
LB: loop body
LE: loop exit
PB: predicated region body
PF: predicated region fallthrough
CT: control target
= control target key end

     0   :  { %s449_s12 = smov 0   ;;  %s451_s13 = smov 0   ;;  %s485_s0 = inlined_call_operand.vmem [shape: f32[8,1], index: 0, kind: input, shape index: {}]   ;;  %s486_s1 = inlined_call_operand.vmem [shape: f32[8,1], index: 1, kind: input, shape index: {}]   ;;  %s487_s2 = inlined_call_operand.vmem [shape: f32[8,256], index: 2, kind: input, shape index: {}]   ;;  %s488_s3 = inlined_call_operand.vmem [shape: f32[8,256], index: 3, kind: output, shape index: {}]  }
   0x1   :  { %s453_s14 = smov 0  }
   0x2 LB: > { %s22_s15 = sadd.s32 1, %s422_s13  ;;  %p373_p0 = scmp.ge.s32.totalorder %s426_s14, 1  ;;  %s426_s14 = sphi %s453_s14, %s13_s14   ;;  %s422_s13 = sphi %s451_s13, %s490_s13   ;;  %s418_s12 = sphi %s449_s12, %s489_s12  }
   0x3   : > { %p23_p1 = scmp.ge.s32.totalorder %s22_s15, 2  ;;  %p174_p2 = scmp.lt.s32.totalorder %s426_s14, 3 }
   0x5   : > { %s492_s15 = smov (%p23_p1, %s22_s15), 0  ;;  %p175_p3 = pnand %p373_p0, %p174_p2 }
   0x6   : > { %p222_p4 = scmp.lt.s32.totalorder (!%p175_p3), %s418_s12, 1 }
   0x7   : > { %178 = sbr.rel (%p175_p3) target bundleno = 146 (0x92), region = 32 }
   0xc   : > { %v238_v0 = vld [vmem:[%s485_s0] sm:$0xff]  ;;  %v428_v1 = vmov 0   ;;  %s494_s12 = smov (!%p222_p4, %s418_s12), 1 }
   0xd   : > { %403 = vset.pattern.permute.xlu0 %v428_v1  ;;  %v239_v2 = vld [vmem:[%s486_s1] sm:$0xff]  ;;  %s374_s20 = sshll.u32 %s494_s12, 3 }
   0xe   : > { %242 = vperm.xlu0 %403, %v238_v0   ;;  %s227_s23 = scalar_lea.vmem %s487_s2, %s374_s20  ;;  %s235_s26 = scalar_lea.vmem %s488_s3, %s374_s20 }
   0xf   : > { %v236_v3 = vld [vmem:[%s227_s23] sm:$0xff] }
  0x10   : > { %vm237_vm0 = vcmp.ge.f32.partialorder %v236_v3, 0.0 }
  0x12   : > { %247 = vperm.xlu0 %403, %v239_v2  }
  0x89   : > { %v243_v4 = vpop.permute.xlu0 %242 }
  0x8d   : > { %v248_v5 = vpop.permute.xlu0 %247 }
  0x8e   : > { %v250_v6 = vsel %vm237_vm0, %v243_v4, %v248_v5 }
  0x8f   : > { %v251_v7 = vmul.f32 %v250_v6, %v236_v3 }
  0x91   : > { %252 = vst [vmem:[%s235_s26] sm:$0xff] %v251_v7 }
  0x92 PF: > { %s13_s14 = sadd.s32 1, %s426_s14   ;;  %s489_s12 = smov %s422_s13 }
  0x93   : > { %p10_p5 = scmp.ge.s32.totalorder %s13_s14, 4   ;;  %s490_s13 = smov %s492_s15 }
  0x95   :  { %12 = sbr.rel (!%p10_p5) target bundleno = 2 (0x2), region = 68 }

</bundles_post_ra>
